<compile_context>
chip_gen: v5e
topology: v5e:2x2
jax: 0.10.0
libtpu: 0.0.40
codegen_flags: <defaults>
</compile_context>

<pallas_src>
import jax
import jax.numpy as jnp
from jax.experimental import pallas as pl
from jax.experimental.pallas import tpu as pltpu

_TARGET_BLOCK_BYTES = 2 << 20   # ~2 MiB per input block per pipeline buffer
_VMEM_LIMIT_BYTES = 32 << 20    # <= physical VMEM on v5e/v6e/v7x


def _round_up(a, m):
    return -(-a // m) * m


def _make_kernel(tile_rows, valid_rows, needs_row_mask):
    """Build the per-tile kernel; tile_rows / valid_rows are static ints."""

    def kernel(e_ref, x_ref, y_ref, r_ref, o_ref):
        e = e_ref[...].astype(jnp.float32)
        x = x_ref[...].astype(jnp.float32)
        y = y_ref[...].astype(jnp.float32)
        r = r_ref[...].astype(jnp.float32)
        diff = jnp.abs(e - x - (y - r))          # pure VPU, hidden under DMA

        def _store(vals):
            # Sublane-only reduce -> (1, lanes); lanes stay dense.
            o_ref[0] = jnp.sum(vals, axis=0, keepdims=True)

        if not needs_row_mask:
            _store(diff)
        else:
            i = pl.program_id(0)
            is_last = i == pl.num_programs(0) - 1

            @pl.when(jnp.logical_not(is_last))
            def _():
                _store(diff)

            @pl.when(is_last)
            def _():
                # Pallas pads the ragged last block with unspecified data;
                # mask rows past the true row count (free VPU select).
                row_ids = jax.lax.broadcasted_iota(jnp.int32, diff.shape, 0)
                valid = (i * tile_rows + row_ids) < valid_rows
                _store(jnp.where(valid, diff, 0.0))

    return kernel


def align_loss(y_hat_edit, x, y_hat, rec2):
    """Pallas implementation of AlignLoss.forward. Inputs are NCHW, same shape."""
    n = x.shape[0]
    total = 1
    for d in x.shape:
        total *= d

    # Lane-dense layout without a wrapper-side pad copy: pick the widest lane
    # count (multiple of 128) that divides the element count.
    lanes = None
    for cand in (512, 256, 128):
        if total % cand == 0:
            lanes = cand
            break
    pad = 0
    if lanes is None:
        lanes = 512
        pad = _round_up(total, lanes) - total   # rare tiny tail pad (<512 elems)

    rows = (total + pad) // lanes

    itemsize = max(int(jnp.dtype(a.dtype).itemsize)
                   for a in (y_hat_edit, x, y_hat, rec2))

    # Dtype-aware tile (~2 MiB / input block). Cap at ~half the rows so the
    # "parallel" grid keeps >= 2 steps (v7x megacore); rows multiple of 8.
    target_rows = max(8, (_TARGET_BLOCK_BYTES // (lanes * itemsize)) // 8 * 8)
    half_rows = _round_up(pl.cdiv(rows, 2), 8)
    tile_rows = max(8, min(target_rows, half_rows))
    num_tiles = pl.cdiv(rows, tile_rows)
    needs_row_mask = (rows % tile_rows) != 0    # ragged last tile -> mask in-kernel

    def prep(a):
        flat = a.reshape(-1)
        if pad:
            flat = jnp.pad(flat, (0, pad))      # only when 128 does not divide total
        return flat.reshape(rows, lanes)

    e2, x2, y2, r2 = (prep(a) for a in (y_hat_edit, x, y_hat, rec2))

    in_spec = pl.BlockSpec((tile_rows, lanes), lambda i: (i, 0))
    # Rank-3 output so the (sublane, lane) block dims equal the full array
    # dims (1, lanes): one lane-dense partial-sum row per grid step.
    out_spec = pl.BlockSpec((1, 1, lanes), lambda i: (i, 0, 0))

    bytes_in = sum(int(jnp.dtype(a.dtype).itemsize) * total
                   for a in (y_hat_edit, x, y_hat, rec2))
    cost = pl.CostEstimate(
        flops=5 * total,
        transcendentals=0,
        bytes_accessed=bytes_in + num_tiles * lanes * 4,
    )

    partials = pl.pallas_call(
        _make_kernel(tile_rows, rows, needs_row_mask),
        out_shape=jax.ShapeDtypeStruct((num_tiles, 1, lanes), jnp.float32),
        grid=(num_tiles,),
        in_specs=[in_spec, in_spec, in_spec, in_spec],
        out_specs=out_spec,
        compiler_params=pltpu.CompilerParams(
            dimension_semantics=("parallel",),
            vmem_limit_bytes=_VMEM_LIMIT_BYTES,
        ),
        cost_estimate=cost,
    )(e2, x2, y2, r2)

    # mean over samples of per-sample L1, then / n_samples  ==  sum / n^2.
    return jnp.sum(partials) / (n * n)


def align_loss_ref(y_hat_edit, x, y_hat, rec2):
    # Pure-JAX reference for sanity checking.
    n = x.shape[0]
    f = lambda a: a.astype(jnp.float32)
    diff = f(y_hat_edit) - f(x) - (f(y_hat) - f(rec2))
    per_sample = jnp.sum(jnp.abs(diff), axis=(1, 2, 3))
    return jnp.mean(per_sample) / n


def _check(shape, key, rtol=1e-4, atol=1e-5):
    k1, k2, k3, k4 = jax.random.split(key, 4)
    e = jax.random.normal(k1, shape, dtype=jnp.float32)
    x = jax.random.normal(k2, shape, dtype=jnp.float32)
    y = jax.random.normal(k3, shape, dtype=jnp.float32)
    r = jax.random.normal(k4, shape, dtype=jnp.float32)
    out = jax.block_until_ready(align_loss(e, x, y, r))
    ref = jax.block_until_ready(align_loss_ref(e, x, y, r))
    assert jnp.allclose(out, ref, rtol=rtol, atol=atol), (shape, out, ref)


if __name__ == "__main__":
    key = jax.random.PRNGKey(0)
    k0, k1, k2 = jax.random.split(key, 3)

    # Primary shape from the module spec (single tile, masked ragged rows).
    _check((2, 4, 16, 16), k0)
    # Multi-tile grid with a ragged last tile (lanes=128 path, no pad).
    _check((2, 3, 40, 40), k1)
    # Element count not a multiple of 128 -> tiny tail-pad fallback path.
    _check((2, 3, 17, 19), k2)

    print("KERNEL_OK")
</pallas_src>

<mosaic_0001>
module attributes {stable_mosaic.version = 11 : i64} {
  func.func @kernel(%arg0: i32, %arg1: memref<8x512xf32, #tpu.memory_space<vmem>>, %arg2: memref<8x512xf32, #tpu.memory_space<vmem>>, %arg3: memref<8x512xf32, #tpu.memory_space<vmem>>, %arg4: memref<8x512xf32, #tpu.memory_space<vmem>>, %arg5: memref<1x1x512xf32, #tpu.memory_space<vmem>>) attributes {dimension_semantics = [#tpu.dimension_semantics<parallel>], iteration_bounds = array<i64: 1>, scalar_prefetch = 0 : i64, scratch_operands = 0 : i64, tpu.core_type = #tpu.core_type<tc>, window_params = [{transform_indices = @transform_0, window_bounds = array<i64: 8, 512>}, {transform_indices = @transform_1, window_bounds = array<i64: 8, 512>}, {transform_indices = @transform_2, window_bounds = array<i64: 8, 512>}, {transform_indices = @transform_3, window_bounds = array<i64: 8, 512>}, {transform_indices = @transform_4, window_bounds = array<i64: 1, 1, 512>}]} {
    %c0 = arith.constant 0 : index
    %c0_0 = arith.constant 0 : index
    %0 = vector.load %arg1[%c0, %c0_0] : memref<8x512xf32, #tpu.memory_space<vmem>>, vector<8x512xf32>
    %c0_1 = arith.constant 0 : index
    %c0_2 = arith.constant 0 : index
    %1 = vector.load %arg2[%c0_1, %c0_2] : memref<8x512xf32, #tpu.memory_space<vmem>>, vector<8x512xf32>
    %c0_3 = arith.constant 0 : index
    %c0_4 = arith.constant 0 : index
    %2 = vector.load %arg3[%c0_3, %c0_4] : memref<8x512xf32, #tpu.memory_space<vmem>>, vector<8x512xf32>
    %c0_5 = arith.constant 0 : index
    %c0_6 = arith.constant 0 : index
    %3 = vector.load %arg4[%c0_5, %c0_6] : memref<8x512xf32, #tpu.memory_space<vmem>>, vector<8x512xf32>
    %4 = arith.subf %0, %1 : vector<8x512xf32>
    %5 = arith.subf %2, %3 : vector<8x512xf32>
    %6 = arith.subf %4, %5 : vector<8x512xf32>
    %7 = math.absf %6 : vector<8x512xf32>
    %c0_i32 = arith.constant 0 : i32
    %8 = arith.cmpi eq, %arg0, %c0_i32 : i32
    %true = arith.constant true
    %9 = arith.xori %8, %true : i1
    %10 = arith.extui %9 : i1 to i32
    %c0_i32_7 = arith.constant 0 : i32
    %11 = arith.cmpi ne, %10, %c0_i32_7 : i32
    scf.if %11 {
      %cst = arith.constant dense<0.000000e+00> : vector<512xf32>
      %14 = vector.multi_reduction <add>, %7, %cst [0] : vector<8x512xf32> to vector<512xf32>
      %15 = vector.shape_cast %14 : vector<512xf32> to vector<1x512xf32>
      %c0_9 = arith.constant 0 : index
      %c0_10 = arith.constant 0 : index
      %c0_11 = arith.constant 0 : index
      %16 = vector.load %arg5[%c0_9, %c0_10, %c0_11] : memref<1x1x512xf32, #tpu.memory_space<vmem>>, vector<1x1x512xf32>
      %17 = vector.shape_cast %16 : vector<1x1x512xf32> to vector<1x512xf32>
      %18 = vector.shape_cast %15 : vector<1x512xf32> to vector<1x1x512xf32>
      tpu.vector_store %arg5[%c0_9, %c0_10, %c0_11], %18 {strides = array<i32>} : memref<1x1x512xf32, #tpu.memory_space<vmem>>, vector<1x1x512xf32>,
    } else {
    }
    %12 = arith.extui %8 : i1 to i32
    %c0_i32_8 = arith.constant 0 : i32
    %13 = arith.cmpi ne, %12, %c0_i32_8 : i32
    scf.if %13 {
      %14 = tpu.iota {dimensions = array<i32: 0>} : vector<8x512xi32>
      %c8_i32 = arith.constant 8 : i32
      %15 = arith.muli %arg0, %c8_i32 : i32
      %16 = vector.broadcast %15 : i32 to vector<8x512xi32>
      %17 = arith.addi %16, %14 : vector<8x512xi32>
      %c4_i32 = arith.constant 4 : i32
      %18 = vector.broadcast %c4_i32 : i32 to vector<8x512xi32>
      %19 = arith.cmpi slt, %17, %18 : vector<8x512xi32>
      %cst = arith.constant 0.000000e+00 : f32
      %20 = vector.broadcast %cst : f32 to vector<8x512xf32>
      %21 = arith.select %19, %7, %20 : vector<8x512xi1>, vector<8x512xf32>
      %cst_9 = arith.constant dense<0.000000e+00> : vector<512xf32>
      %22 = vector.multi_reduction <add>, %21, %cst_9 [0] : vector<8x512xf32> to vector<512xf32>
      %23 = vector.shape_cast %22 : vector<512xf32> to vector<1x512xf32>
      %c0_10 = arith.constant 0 : index
      %c0_11 = arith.constant 0 : index
      %c0_12 = arith.constant 0 : index
      %24 = vector.load %arg5[%c0_10, %c0_11, %c0_12] : memref<1x1x512xf32, #tpu.memory_space<vmem>>, vector<1x1x512xf32>
      %25 = vector.shape_cast %24 : vector<1x1x512xf32> to vector<1x512xf32>
      %26 = vector.shape_cast %23 : vector<1x512xf32> to vector<1x1x512xf32>
      tpu.vector_store %arg5[%c0_10, %c0_11, %c0_12], %26 {strides = array<i32>} : memref<1x1x512xf32, #tpu.memory_space<vmem>>, vector<1x1x512xf32>,
    } else {
    }
    return
  }
  func.func @transform_0(%arg0: i32) -> (i32, i32) {
    %c0_i32 = arith.constant 0 : i32
    %c0_i32_0 = arith.constant 0 : i32
    return %arg0, %c0_i32 : i32, i32
  }
  func.func @transform_1(%arg0: i32) -> (i32, i32) {
    %c0_i32 = arith.constant 0 : i32
    %c0_i32_0 = arith.constant 0 : i32
    return %arg0, %c0_i32 : i32, i32
  }
  func.func @transform_2(%arg0: i32) -> (i32, i32) {
    %c0_i32 = arith.constant 0 : i32
    %c0_i32_0 = arith.constant 0 : i32
    return %arg0, %c0_i32 : i32, i32
  }
  func.func @transform_3(%arg0: i32) -> (i32, i32) {
    %c0_i32 = arith.constant 0 : i32
    %c0_i32_0 = arith.constant 0 : i32
    return %arg0, %c0_i32 : i32, i32
  }
  func.func @transform_4(%arg0: i32) -> (i32, i32, i32) {
    %c0_i32 = arith.constant 0 : i32
    %c0_i32_0 = arith.constant 0 : i32
    %c0_i32_1 = arith.constant 0 : i32
    return %arg0, %c0_i32, %c0_i32_0 : i32, i32, i32
  }
}

</mosaic_0001>

<bundles_post_ra>
// kernel: tpu_custom_call.1
= control target key start
LH: loop header
LB: loop body
LE: loop exit
PB: predicated region body
PF: predicated region fallthrough
CT: control target
= control target key end

     0   :  { %9 = vsyncpa [#allocation3], 0  ;;  %s456_s0 = inlined_call_operand.hbm [shape: f32[4,512], index: 0, kind: input, shape index: {}]   ;;  %s457_s1 = inlined_call_operand.hbm [shape: f32[4,512], index: 1, kind: input, shape index: {}]   ;;  %s458_s2 = inlined_call_operand.hbm [shape: f32[4,512], index: 2, kind: input, shape index: {}]   ;;  %s459_s3 = inlined_call_operand.hbm [shape: f32[4,512], index: 3, kind: input, shape index: {}]   ;;  %s460_s4 = inlined_call_operand.hbm [shape: f32[1,1,512], index: 4, kind: output, shape index: {}]  }
   0x1   :  { %10 = vsyncpa [#allocation6], 0 }
   0x2   :  { %11 = vsyncpa [#allocation9], 0 }
   0x3   :  { %12 = vsyncpa [#allocation4], 0 }
   0x4   :  { %16 = vsyncadd [#allocation3], 256  ;;  %s17_s17 = sshll.u32 %s456_s0, 4  ;;  %s409_s18 = smov [#allocation2]   ;;  %s18_s17 = int_to_ptr.hbm [resolvable:$true] %s17_s17 }
   0x5   :  { %s19_s19 = sshll.u32 %s409_s18, 4  ;;  %s410_s20 = smov 256   ;;  %s20_s19 = int_to_ptr.vmem [resolvable:$true] %s19_s19 }
   0x6   :  { %s411_s21 = smov 16  }
   0x7   :  { %25 = dma.hbm_to_vmem [thread:$0]  %s18_s17, 256, %s20_s19, [#allocation3], %s410_s20, %s410_s20, %s411_s21  }
   0x8   :  { %29 = vsyncadd [#allocation6], 256  ;;  %s30_s24 = sshll.u32 %s457_s1, 4  ;;  %s412_s25 = smov [#allocation5]   ;;  %s31_s24 = int_to_ptr.hbm [resolvable:$true] %s30_s24 }
   0x9   :  { %s32_s26 = sshll.u32 %s412_s25, 4  ;;  %s33_s26 = int_to_ptr.vmem [resolvable:$true] %s32_s26 }
   0xa   :  { %38 = dma.hbm_to_vmem [thread:$0]  %s31_s24, 256, %s33_s26, [#allocation6], %s410_s20, %s410_s20, %s411_s21  }
   0xb   :  { %42 = vsyncadd [#allocation6], 256  ;;  %s43_s28 = sshll.u32 %s458_s2, 4  ;;  %s413_s29 = smov [#allocation7]   ;;  %s44_s28 = int_to_ptr.hbm [resolvable:$true] %s43_s28 }
   0xc   :  { %s45_s30 = sshll.u32 %s413_s29, 4  ;;  %s46_s30 = int_to_ptr.vmem [resolvable:$true] %s45_s30 }
   0xd   :  { %51 = dma.hbm_to_vmem [thread:$0]  %s44_s28, 256, %s46_s30, [#allocation6], %s410_s20, %s410_s20, %s411_s21  }
   0xe   :  { %55 = vsyncadd [#allocation9], 256  ;;  %s56_s1 = sshll.u32 %s459_s3, 4  ;;  %s414_s7 = smov [#allocation8]   ;;  %s57_s1 = int_to_ptr.hbm [resolvable:$true] %s56_s1 }
   0xf   :  { %s58_s8 = sshll.u32 %s414_s7, 4  ;;  %s59_s8 = int_to_ptr.vmem [resolvable:$true] %s58_s8 }
  0x10   :  { %64 = dma.hbm_to_vmem [thread:$0]  %s57_s1, 256, %s59_s8, [#allocation9], %s410_s20, %s410_s20, %s411_s21  }
  0x11   :  { %401 = dma.done.wait [#allocation3], 512  }
  0x12   :  { %402 = vsyncadd [#allocation3], 4294966784 }
  0x13   :  { %403 = dma.done.wait [#allocation6], 1024  }
  0x14   :  { %404 = vsyncadd [#allocation6], 4294966272 }
  0x15   :  { %405 = dma.done.wait [#allocation9], 512  }
  0x16   :  { %406 = vsyncadd [#allocation9], 4294966784  ;;  %v81_v0 = vld [vmem:[#allocation2] sm:$0xff]  ;;  %v83_v5 = vld [vmem:[#allocation2 + $0x10] sm:$0xff]  ;;  %v183_v28 = vlaneseq  ;;  %vm243_vm1 = vcmask 1040384   ;;  %vm245_vm2 = vcmask 1042434  }
  0x17   :  { %v85_v1 = vld [vmem:[#allocation5] sm:$0xff]  ;;  %v87_v6 = vld [vmem:[#allocation5 + $0x10] sm:$0xff]  ;;  %v82_v11 = vld [vmem:[#allocation2 + $0x8] sm:$0xff]  ;;  %s415_s2 = smov [#allocation10]   ;;  %s262_s11 = sshll.u32 %s460_s4, 4  ;;  %vm247_vm3 = vcmask 1041408   ;;  %s263_s11 = int_to_ptr.hbm [resolvable:$true] %s262_s11 }
  0x18   :  { %v89_v2 = vld [vmem:[#allocation7] sm:$0xff]  ;;  %v97_v4 = vsub.f32 %v81_v0, %v85_v1  ;;  %v91_v8 = vld [vmem:[#allocation7 + $0x10] sm:$0xff]  ;;  %v99_v10 = vsub.f32 %v83_v5, %v87_v6  ;;  %v86_v13 = vld [vmem:[#allocation5 + $0x8] sm:$0xff]  ;;  %v184_v33 = vshrl.u32 %v183_v28, 7  ;;  %s260_s3 = sshll.u32 %s415_s2, 4  ;;  %vm252_vm4 = vcmp.lt.s32.totalorder %v183_v28, 512  ;;  %s261_s3 = int_to_ptr.vmem [resolvable:$true] %s260_s3 }
  0x19   :  { %v93_v3 = vld [vmem:[#allocation8] sm:$0xff]  ;;  %v95_v9 = vld [vmem:[#allocation8 + $0x10] sm:$0xff]  ;;  %v90_v14 = vld [vmem:[#allocation7 + $0x8] sm:$0xff]  ;;  %v98_v17 = vsub.f32 %v82_v11, %v86_v13 }
  0x1a   :  { %v101_v7 = vsub.f32 %v89_v2, %v93_v3  ;;  %v103_v12 = vsub.f32 %v91_v8, %v95_v9  ;;  %v94_v15 = vld [vmem:[#allocation8 + $0x8] sm:$0xff]  ;;  %v84_v19 = vld [vmem:[#allocation2 + $0x18] sm:$0xff]  ;;  %vm188_vm0 = vcmp.lt.s32.totalorder %v184_v33, 4 }
  0x1b   :  { %v102_v18 = vsub.f32 %v90_v14, %v94_v15  ;;  %v88_v20 = vld [vmem:[#allocation5 + $0x18] sm:$0xff] }
  0x1c   :  { %v105_v16 = vsub.f32 %v97_v4, %v101_v7  ;;  %v92_v21 = vld [vmem:[#allocation7 + $0x18] sm:$0xff]  ;;  %v107_v22 = vsub.f32 %v99_v10, %v103_v12  ;;  %v100_v24 = vsub.f32 %v84_v19, %v88_v20 }
  0x1d   :  { %v96_v23 = vld [vmem:[#allocation8 + $0x18] sm:$0xff]  ;;  %v106_v26 = vsub.f32 %v98_v17, %v102_v18 }
  0x1e   :  { %v109_v25 = vand.u32 2147483647, %v105_v16  ;;  %v104_v27 = vsub.f32 %v92_v21, %v96_v23  ;;  %v111_v29 = vand.u32 2147483647, %v107_v22 }
  0x1f   :  { %v110_v30 = vand.u32 2147483647, %v106_v26 }
  0x20   :  { %193 = vst [vmem:[#allocation1] ss:$2 sm:$0xff] %v109_v25  ;;  %v108_v31 = vsub.f32 %v100_v24, %v104_v27 }
  0x21   :  { %195 = vst [vmem:[#allocation1 + $0x1] ss:$2 sm:$0xff] %v111_v29 }
  0x22   :  { %197 = vst [vmem:[#allocation1 + $0x10] ss:$2 sm:$0xff] %v110_v30  ;;  %v112_v32 = vand.u32 2147483647, %v108_v31 }
  0x24   :  { %199 = vst [vmem:[#allocation1 + $0x11] ss:$2 sm:$0xff] %v112_v32 }
  0x28   :  { %v200_v34 = vld.sshfl [vmem:[#allocation1] sm:$0xff pattern:$0x75316420]  ;;  %v201_v35 = vld.sshfl [vmem:[#allocation1 + $0x8] sm:$0xff pattern:$0x75316420] }
  0x29   :  { %v208_v36 = vsel %vm188_vm0, %v200_v34, 0.0  ;;  %v209_v37 = vsel %vm188_vm0, %v201_v35, 0.0 }
  0x2a   :  { %v212_v38 = vrot.slane %v208_v36, 4  ;;  %v218_v39 = vrot.slane %v209_v37, 4 }
  0x2b   :  { %v202_v40 = vld.sshfl [vmem:[#allocation1 + $0x10] sm:$0xff pattern:$0x75316420]  ;;  %v203_v41 = vld.sshfl [vmem:[#allocation1 + $0x18] sm:$0xff pattern:$0x75316420] }
  0x2c   :  { %v210_v42 = vsel %vm188_vm0, %v202_v40, 0.0  ;;  %v211_v43 = vsel %vm188_vm0, %v203_v41, 0.0  ;;  %v213_v44 = vadd.f32 %v212_v38, %v208_v36  ;;  %v219_v45 = vadd.f32 %v218_v39, %v209_v37 }
  0x2d   :  { %v224_v46 = vrot.slane %v210_v42, 4  ;;  %v230_v47 = vrot.slane %v211_v43, 4 }
  0x2e   :  { %v214_v48 = vrot.slane %v213_v44, 2  ;;  %v220_v49 = vrot.slane %v219_v45, 2 }
  0x2f   :  { %v225_v50 = vadd.f32 %v224_v46, %v210_v42  ;;  %v231_v51 = vadd.f32 %v230_v47, %v211_v43 }
  0x30   :  { %v215_v52 = vadd.f32 %v214_v48, %v213_v44  ;;  %v221_v53 = vadd.f32 %v220_v49, %v219_v45 }
  0x31   :  { %v226_v54 = vrot.slane %v225_v50, 2  ;;  %v232_v55 = vrot.slane %v231_v51, 2 }
  0x32   :  { %v222_v56 = vrot.slane %v221_v53, 1  ;;  %v216_v57 = vrot.slane %v215_v52, 1 }
  0x33   :  { %v227_v58 = vadd.f32 %v226_v54, %v225_v50  ;;  %v233_v59 = vadd.f32 %v232_v55, %v231_v51 }
  0x34   :  { %v223_v60 = vadd.f32 %v222_v56, %v221_v53  ;;  %v217_v0 = vadd.f32 %v216_v57, %v215_v52 }
  0x35   :  { %v228_v61 = vrot.slane %v227_v58, 1  ;;  %v234_v62 = vrot.slane %v233_v59, 1 }
  0x36   :  { %v240_v63 = vrot.slane %v223_v60, 7 }
  0x37   :  { %v229_v1 = vadd.f32 %v228_v61, %v227_v58  ;;  %v235_v2 = vadd.f32 %v234_v62, %v233_v59 }
  0x38   :  { %v244_v5 = vsel %vm243_vm1, %v217_v0, %v240_v63 }
  0x39   :  { %v241_v3 = vrot.slane %v229_v1, 6  ;;  %v242_v4 = vrot.slane %v235_v2, 5 }
  0x3b   :  { %v246_v6 = vsel %vm245_vm2, %v241_v3, %v242_v4 }
  0x3c   :  { %v248_v7 = vsel %vm247_vm3, %v244_v5, %v246_v6 }
  0x3d   :  { %254 = vst.msk [vmem:[#allocation10] sm:$0xf] %vm252_vm4, %v248_v7 }
  0x3e   :  { %265 = dma.vmem_to_hbm [thread:$0]  %s261_s3, 64, %s263_s11, [#allocation4]  }
  0x3f   :  { %407 = dma.done.wait [#allocation4], 64  }
  0x40   :  { %408 = vsyncadd [#allocation4], 4294967232 }
  0x41   :  { %270 = vsyncpa [#allocation3], 1 }
  0x42   :  { %271 = vsyncpa [#allocation6], 1 }
  0x43   :  { %272 = vsyncpa [#allocation9], 1 }
  0x44   :  { %273 = vsyncpa [#allocation4], 1 }

</bundles_post_ra>
